<compile_context>
chip_gen: v5e
topology: v5e:2x2
jax: 0.10.0
libtpu: 0.0.40
codegen_flags: <defaults>
</compile_context>

<pallas_src>
import numpy as np

import jax
import jax.numpy as jnp
from jax.experimental import pallas as pl
from jax.experimental.pallas import tpu as pltpu


LANES = 128                 # TPU lane width
_A_BUFFERS = 3              # deeper buffering on the streamed (mem-bound) A row axis
_INVARIANT_BUFFERS = 1      # grid-invariant operands need only a single VMEM buffer


def _round_up(v, m):
    return ((v + m - 1) // m) * m


def _tpu_memory_profile():
    """(vmem_limit_bytes, fused_a_bytes_limit, default_tile_rows) per TPU generation."""
    try:
        vmem_cap = int(pltpu.get_tpu_info().vmem_capacity_bytes)
    except Exception:
        vmem_cap = 64 * 1024 * 1024            # conservative fallback (v7x-like)
    if vmem_cap >= 96 * 1024 * 1024:           # v5e / v6e: 128 MiB physical VMEM
        # Fused-resident path reads A once instead of twice -> worth the most on the
        # lower-BW chips; leave headroom for f32 intermediates + compiler scratch.
        return 100 * 1024 * 1024, 64 * 1024 * 1024, 512
    # v7x: 64 MiB VMEM, 2 TCs, 3.2 TB/s HBM -> prefer the dual-core tiled path early.
    return 48 * 1024 * 1024, 20 * 1024 * 1024, 256


def _spec(shape, index_map, buffers=None):
    """BlockSpec with an optional multi-buffering hint (ignored if unsupported)."""
    if buffers is not None and hasattr(pl, "Buffered"):
        try:
            return pl.BlockSpec(shape, index_map, pipeline_mode=pl.Buffered(buffers))
        except TypeError:
            pass
    return pl.BlockSpec(shape, index_map)


def _choose_tile_rows(n, hp, desired, vmem_limit):
    """Largest power-of-two multiple of 128 rows such that the streamed A buffers plus
    the single-buffered (N_pad, Hp) invariant operand fit the VMEM budget, with >= 2
    (preferably an even number of) row tiles for v7x megacore balance."""
    n_pad0 = _round_up(n, LANES)
    budget = (3 * vmem_limit) // 4             # leave room for outputs / compiler scratch
    best = LANES
    for tr in (1024, 512, 256, 128):
        if tr > desired:
            continue
        if tr >= n_pad0 and tr > LANES:
            continue                           # want >= 2 row tiles when possible
        if _A_BUFFERS * tr * n_pad0 * 2 + n_pad0 * hp * 2 > budget:
            continue
        best = tr
        break
    n_tiles = pl.cdiv(_round_up(n, best), best)
    if best > LANES and n_tiles % 2 == 1 and n_tiles < 8:
        best //= 2                             # even tile count balances the megacore
    return best


# ----------------------------- Pallas kernels ------------------------------ #

def _fused_kernel(a_ref, xw1s_ref, dinv_ref, b1_ref, w2_ref, b2_ref,
                  wfc_ref, bfc_ref, out_ref):
    """Whole forward pass, single block, every operand resident in VMEM.

    a_ref holds the *raw* adjacency (A + I); gcn_norm is applied on the fly via
    A_norm @ M == dinv ⊙ (A_raw @ (dinv ⊙ M)), with the column scale pre-folded
    into xw1s / the dinv-scaled H1.
    """
    a = a_ref[...]                                         # bf16 [N, N]
    dinv = dinv_ref[...]                                   # f32  [N, 1]
    # layer 1: relu(A_norm @ (X W1) + b1)
    h1 = jnp.dot(a, xw1s_ref[...], preferred_element_type=jnp.float32)
    h1 = jnp.maximum(dinv * h1 + b1_ref[...], 0.0)
    h1s = (dinv * h1).astype(jnp.bfloat16)                 # dinv-scaled for layer 2
    # layer 2: A_norm @ (H1 W2) + b2
    hw2 = jnp.dot(h1s, w2_ref[...], preferred_element_type=jnp.float32)
    h2 = dinv * jnp.dot(a, hw2.astype(jnp.bfloat16),
                        preferred_element_type=jnp.float32) + b2_ref[...]
    # head: round(relu(H2 @ Wfc + bfc)); Wfc zero-padded to 128 lanes so the store
    # is lane-dense (the real scalar lives in column 0).
    out = jnp.dot(h2, wfc_ref[...], preferred_element_type=jnp.float32) + bfc_ref[...]
    out_ref[...] = jnp.round(jnp.maximum(out, 0.0))        # matches torch.round


def _layer1_tiled_kernel(a_ref, xw1s_ref, dinv_ref, b1_ref, h1s_ref):
    """H1s[rows] = dinv ⊙ relu(dinv ⊙ (A_raw[rows, :] @ XW1s) + b1)."""
    dinv_r = dinv_ref[...]                                 # f32 (tm, 1)
    h1 = jnp.dot(a_ref[...], xw1s_ref[...], preferred_element_type=jnp.float32)
    h1 = jnp.maximum(dinv_r * h1 + b1_ref[...], 0.0)
    h1s_ref[...] = (dinv_r * h1).astype(h1s_ref.dtype)     # bf16, already dinv-scaled
    # (padded rows have dinv == 0 -> H1s stays exactly 0 there)


def _layer2_head_tiled_kernel(a_ref, h1s_ref, dinv_ref, w2_ref, b2_ref,
                              wfc_ref, bfc_ref, out_ref):
    """out[rows] = round(relu((dinv ⊙ ((A_raw[rows,:] @ H1s) @ W2) + b2) @ Wfc + bfc)).

    Left association (A @ H1s) @ W2 == A @ (H1s @ W2) avoids recomputing H1s @ W2
    for every row tile while A is streamed a second time.
    """
    ah1 = jnp.dot(a_ref[...], h1s_ref[...], preferred_element_type=jnp.float32)
    h2 = dinv_ref[...] * jnp.dot(ah1.astype(jnp.bfloat16), w2_ref[...],
                                 preferred_element_type=jnp.float32) + b2_ref[...]
    out = jnp.dot(h2, wfc_ref[...], preferred_element_type=jnp.float32) + bfc_ref[...]
    out_ref[...] = jnp.round(jnp.maximum(out, 0.0))


# ------------------------------ pallas wrappers ----------------------------- #

def _gnn_fused(a_raw, xw1s, dinv, b1, w2, b2, wfc, bfc, *, vmem_limit):
    """Grid-less single-block path: everything VMEM-resident, A read from HBM once."""
    n_pad = a_raw.shape[0]
    vmem = lambda: pl.BlockSpec(memory_space=pltpu.MemorySpace.VMEM)
    return pl.pallas_call(
        _fused_kernel,
        out_shape=jax.ShapeDtypeStruct((n_pad, LANES), jnp.float32),
        in_specs=[vmem() for _ in range(8)],
        out_specs=vmem(),
        compiler_params=pltpu.CompilerParams(vmem_limit_bytes=vmem_limit),
    )(a_raw, xw1s, dinv, b1, w2, b2, wfc, bfc)


def _gnn_tiled(a_raw, xw1s, dinv, b1, w2, b2, wfc, bfc, *, tile_rows, vmem_limit):
    """Row-tiled path: two pallas_calls, A streamed as (tile_rows, N_pad) bf16 blocks."""
    n_pad, hp = xw1s.shape
    grid = (n_pad // tile_rows,)
    cparams = pltpu.CompilerParams(
        dimension_semantics=("parallel",),     # shards row tiles across TCs on v7x
        vmem_limit_bytes=vmem_limit)

    h1s = pl.pallas_call(
        _layer1_tiled_kernel,
        out_shape=jax.ShapeDtypeStruct((n_pad, hp), jnp.bfloat16),
        grid=grid,
        in_specs=[
            _spec((tile_rows, n_pad), lambda i: (i, 0), _A_BUFFERS),       # A rows (bf16)
            _spec((n_pad, hp), lambda i: (0, 0), _INVARIANT_BUFFERS),      # XW1s (invariant)
            _spec((tile_rows, 1), lambda i: (i, 0)),                       # dinv rows
            _spec((1, hp), lambda i: (0, 0), _INVARIANT_BUFFERS),          # b1
        ],
        out_specs=pl.BlockSpec((tile_rows, hp), lambda i: (i, 0)),
        compiler_params=cparams,
    )(a_raw, xw1s, dinv, b1)

    out = pl.pallas_call(
        _layer2_head_tiled_kernel,
        out_shape=jax.ShapeDtypeStruct((n_pad, LANES), jnp.float32),
        grid=grid,
        in_specs=[
            _spec((tile_rows, n_pad), lambda i: (i, 0), _A_BUFFERS),       # A rows (bf16)
            _spec((n_pad, hp), lambda i: (0, 0), _INVARIANT_BUFFERS),      # H1s (invariant)
            _spec((tile_rows, 1), lambda i: (i, 0)),                       # dinv rows
            _spec((hp, hp), lambda i: (0, 0), _INVARIANT_BUFFERS),         # W2 (bf16)
            _spec((1, hp), lambda i: (0, 0), _INVARIANT_BUFFERS),          # b2
            _spec((hp, LANES), lambda i: (0, 0), _INVARIANT_BUFFERS),      # Wfc (padded)
            _spec((1, LANES), lambda i: (0, 0), _INVARIANT_BUFFERS),       # bfc
        ],
        out_specs=pl.BlockSpec((tile_rows, LANES), lambda i: (i, 0)),
        compiler_params=cparams,
    )(a_raw, h1s, dinv, w2, b2, wfc, bfc)
    return out


# ------------------------------ plain-JAX glue ----------------------------- #

def build_raw_adjacency(edge_index, num_nodes, n_pad):
    """Raw padded adjacency A + I (bf16, integer-valued => exact) and D^{-1/2}.

    The symmetric gcn_norm scaling is folded into the kernels, so no N^2 XLA
    normalization / scaling / cast pass touches HBM.  Duplicate edges accumulate
    and self-loops are added unconditionally (mirrors the dense reference; diverges
    from PyG add_remaining_self_loops only if the edge list already has self-loops).
    """
    src = edge_index[0]
    dst = edge_index[1]
    idx = jnp.arange(num_nodes, dtype=edge_index.dtype)
    a_raw = jnp.zeros((n_pad, n_pad), jnp.bfloat16)
    a_raw = a_raw.at[dst, src].add(1.0)                    # message j -> i lands in A[i, j]
    a_raw = a_raw.at[idx, idx].add(1.0)                    # self loops
    deg = jnp.zeros((n_pad,), jnp.float32).at[dst].add(1.0).at[idx].add(1.0)
    dinv = jnp.where(deg > 0, jax.lax.rsqrt(deg), 0.0)     # 0 on padded rows => they stay 0
    return a_raw, dinv[:, None]                            # (n_pad, n_pad), (n_pad, 1)


def gcn_norm_dense(edge_index, num_nodes):
    """Dense D^{-1/2} (A + I) D^{-1/2} (reference-path only)."""
    src = edge_index[0]
    dst = edge_index[1]
    a = jnp.zeros((num_nodes, num_nodes), dtype=jnp.float32)
    a = a.at[dst, src].add(1.0)
    a = a + jnp.eye(num_nodes, dtype=jnp.float32)
    deg = jnp.sum(a, axis=1)
    dis = jnp.where(deg > 0, jax.lax.rsqrt(deg), 0.0)
    return dis[:, None] * a * dis[None, :]


def _pad2(arr, rows, cols, dtype):
    out = jnp.zeros((rows, cols), dtype)
    return out.at[: arr.shape[0], : arr.shape[1]].set(arr.astype(dtype))


def _prepare_padded_params(params):
    hidden = params["w2"].shape[0]
    hp = _round_up(hidden, LANES)
    in_dim = params["w1"].shape[0]
    return (
        _pad2(params["w1"], in_dim, hp, jnp.float32),   # W1  [in_dim, Hp]  f32 (XLA-side)
        _pad2(params["b1"], 1, hp, jnp.float32),        # b1  [1, Hp]
        _pad2(params["w2"], hp, hp, jnp.bfloat16),      # W2  [Hp, Hp]      bf16
        _pad2(params["b2"], 1, hp, jnp.float32),        # b2  [1, Hp]
        _pad2(params["wfc"], hp, LANES, jnp.float32),   # Wfc [Hp, 128]     (col 0 real)
        _pad2(params["bfc"], 1, LANES, jnp.float32),    # bfc [1, 128]      (col 0 real)
    )


def constraint_gnn_forward(params, x, edge_index, *, force_tiled=False,
                           tile_rows=None):
    """Reproduces ConstraintGNN.forward with gcn_norm folded into the kernels."""
    n = x.shape[0]
    w1p, b1p, w2p, b2p, wfcp, bfcp = _prepare_padded_params(params)
    hp = w2p.shape[0]

    vmem_limit, fused_a_limit, default_tile_rows = _tpu_memory_profile()
    desired_rows = default_tile_rows if tile_rows is None else max(LANES, int(tile_rows))

    use_tiled = force_tiled or (2 * _round_up(n, LANES) ** 2 > fused_a_limit)
    if use_tiled:
        tr = _choose_tile_rows(n, hp, desired_rows, vmem_limit)
        n_pad = _round_up(n, tr)
    else:
        tr = None
        n_pad = _round_up(n, LANES)

    a_raw, dinv = build_raw_adjacency(edge_index, n, n_pad)

    # XW1s = dinv ⊙ (X @ W1): tiny (N x 2 x Hp) matmul done once in XLA, streamed
    # lane-dense in bf16 (no lane-sparse (N, 2) X block inside the kernels).
    xw1 = x.astype(jnp.float32) @ w1p
    xw1s = (jnp.zeros((n_pad, hp), jnp.float32).at[:n].set(dinv[:n] * xw1)
            .astype(jnp.bfloat16))

    if use_tiled:
        out_pad = _gnn_tiled(a_raw, xw1s, dinv, b1p, w2p, b2p, wfcp, bfcp,
                             tile_rows=tr, vmem_limit=vmem_limit)
    else:
        out_pad = _gnn_fused(a_raw, xw1s, dinv, b1p, w2p, b2p, wfcp, bfcp,
                             vmem_limit=vmem_limit)

    out = out_pad[:n, 0:1]                  # real scalar lives in lane 0
    var_mask = x[:, 0] == 1                 # data.x[:, 0] == 1
    return out[var_mask]                    # dynamic-shape gather stays in plain JAX


def reference_forward_f32(params, x, edge_index):
    """Pure f32 plain-JAX reference of the PyTorch module."""
    a = gcn_norm_dense(edge_index, x.shape[0])
    h1 = jnp.maximum(a @ (x @ params["w1"]) + params["b1"], 0.0)
    h2 = a @ (h1 @ params["w2"]) + params["b2"]
    out = jnp.maximum(h2 @ params["wfc"] + params["bfc"], 0.0)
    return jnp.round(out)[x[:, 0] == 1]


def init_params(key, in_dim=2, hidden_dim=64):
    ks = jax.random.split(key, 6)
    scale = 0.1
    return {
        "w1":  scale * jax.random.normal(ks[0], (in_dim, hidden_dim), jnp.float32),
        "b1":  scale * jax.random.normal(ks[1], (1, hidden_dim), jnp.float32),
        "w2":  scale * jax.random.normal(ks[2], (hidden_dim, hidden_dim), jnp.float32),
        "b2":  scale * jax.random.normal(ks[3], (1, hidden_dim), jnp.float32),
        "wfc": scale * jax.random.normal(ks[4], (hidden_dim, 1), jnp.float32),
        "bfc": scale * jax.random.normal(ks[5], (1, 1), jnp.float32),
    }


def make_graph(key, num_nodes, num_undirected_edges):
    k_feat, k_src, k_off = jax.random.split(key, 3)
    var_flag = (jnp.arange(num_nodes) % 2).astype(jnp.float32)  # half are variable nodes
    feat1 = jax.random.normal(k_feat, (num_nodes,), jnp.float32)
    x = jnp.stack([var_flag, feat1], axis=1)                    # [N, 2]
    src = jax.random.randint(k_src, (num_undirected_edges,), 0, num_nodes)
    off = 1 + jax.random.randint(k_off, (num_undirected_edges,), 0, num_nodes - 1)
    dst = (src + off) % num_nodes
    edge_index = jnp.concatenate(
        [jnp.stack([src, dst], axis=0), jnp.stack([dst, src], axis=0)], axis=1
    ).astype(jnp.int32)                                         # [2, 2E]
    return x, edge_index


def _check(out_kernel, out_ref, name):
    got = np.asarray(out_kernel)
    ref = np.asarray(out_ref)
    assert got.shape == ref.shape, (name, got.shape, ref.shape)
    diff = np.abs(got - ref)
    # bf16 streaming of XW1s/H1s (f32 accumulation) can flip round() for values near
    # a *.5 boundary: tolerate a small number of off-by-one flips, never more.
    assert float(diff.max(initial=0.0)) <= 1.0, (name, float(diff.max(initial=0.0)))
    n_mismatch = int(np.sum(diff > 0))
    assert n_mismatch <= max(1, int(0.05 * got.size)), (name, n_mismatch, got.size)


# ---------------------------------- main ----------------------------------- #

if __name__ == "__main__":
    key = jax.random.PRNGKey(0)
    k_param, k_small, k_big = jax.random.split(key, 3)

    params = init_params(k_param, in_dim=2, hidden_dim=64)

    # Small graph (N=16) -> grid-less single-block fused kernel.
    x_s, ei_s = make_graph(k_small, num_nodes=16, num_undirected_edges=12)
    out_s = constraint_gnn_forward(params, x_s, ei_s)
    jax.block_until_ready(out_s)
    _check(out_s, reference_forward_f32(params, x_s, ei_s), "fused")
    assert out_s.shape == (int(jnp.sum(x_s[:, 0] == 1)), 1)

    # Larger graph, forced through the row-tiled "parallel" path (2 pallas_calls).
    x_b, ei_b = make_graph(k_big, num_nodes=700, num_undirected_edges=1500)
    out_b = constraint_gnn_forward(params, x_b, ei_b, force_tiled=True,
                                   tile_rows=256)
    jax.block_until_ready(out_b)
    _check(out_b, reference_forward_f32(params, x_b, ei_b), "tiled")
    assert out_b.shape == (int(jnp.sum(x_b[:, 0] == 1)), 1)

    print("KERNEL_OK")
</pallas_src>

<mosaic_0001>
module attributes {stable_mosaic.version = 11 : i64} {
  func.func @_fused_kernel(%arg0: memref<128x128xbf16, #tpu.memory_space<vmem>>, %arg1: memref<128x128xbf16, #tpu.memory_space<vmem>>, %arg2: memref<128x1xf32, #tpu.memory_space<vmem>>, %arg3: memref<1x128xf32, #tpu.memory_space<vmem>>, %arg4: memref<128x128xbf16, #tpu.memory_space<vmem>>, %arg5: memref<1x128xf32, #tpu.memory_space<vmem>>, %arg6: memref<128x128xf32, #tpu.memory_space<vmem>>, %arg7: memref<1x128xf32, #tpu.memory_space<vmem>>, %arg8: memref<128x128xf32, #tpu.memory_space<vmem>>) attributes {dimension_semantics = [], scalar_prefetch = 0 : i64, scratch_operands = 0 : i64, tpu.core_type = #tpu.core_type<tc>} {
    %c0 = arith.constant 0 : index
    %c0_0 = arith.constant 0 : index
    %0 = vector.load %arg0[%c0, %c0_0] : memref<128x128xbf16, #tpu.memory_space<vmem>>, vector<128x128xbf16>
    %c0_1 = arith.constant 0 : index
    %c0_2 = arith.constant 0 : index
    %1 = vector.load %arg2[%c0_1, %c0_2] : memref<128x1xf32, #tpu.memory_space<vmem>>, vector<128x1xf32>
    %c0_3 = arith.constant 0 : index
    %c0_4 = arith.constant 0 : index
    %2 = vector.load %arg1[%c0_3, %c0_4] : memref<128x128xbf16, #tpu.memory_space<vmem>>, vector<128x128xbf16>
    %cst = arith.constant dense<0.000000e+00> : vector<128x128xf32>
    %3 = tpu.matmul %0, %2, %cst {dimension_numbers = #tpu.dot_dimension_numbers<[1], [0], [0], [1], [0, 0, 1, 1], [], []>} : vector<128x128xbf16>, vector<128x128xbf16>, vector<128x128xf32> -> vector<128x128xf32>
    %4 = vector.broadcast %1 : vector<128x1xf32> to vector<128x128xf32>
    %5 = arith.mulf %4, %3 : vector<128x128xf32>
    %c0_5 = arith.constant 0 : index
    %c0_6 = arith.constant 0 : index
    %6 = vector.load %arg3[%c0_5, %c0_6] : memref<1x128xf32, #tpu.memory_space<vmem>>, vector<1x128xf32>
    %7 = vector.broadcast %6 : vector<1x128xf32> to vector<128x128xf32>
    %8 = arith.addf %5, %7 : vector<128x128xf32>
    %cst_7 = arith.constant 0.000000e+00 : f32
    %9 = vector.broadcast %cst_7 : f32 to vector<128x128xf32>
    %10 = arith.maximumf %8, %9 : vector<128x128xf32>
    %11 = vector.broadcast %1 : vector<128x1xf32> to vector<128x128xf32>
    %12 = arith.mulf %11, %10 : vector<128x128xf32>
    %13 = arith.truncf %12 : vector<128x128xf32> to vector<128x128xbf16>
    %c0_8 = arith.constant 0 : index
    %c0_9 = arith.constant 0 : index
    %14 = vector.load %arg4[%c0_8, %c0_9] : memref<128x128xbf16, #tpu.memory_space<vmem>>, vector<128x128xbf16>
    %cst_10 = arith.constant dense<0.000000e+00> : vector<128x128xf32>
    %15 = tpu.matmul %13, %14, %cst_10 {dimension_numbers = #tpu.dot_dimension_numbers<[1], [0], [0], [1], [0, 0, 1, 1], [], []>} : vector<128x128xbf16>, vector<128x128xbf16>, vector<128x128xf32> -> vector<128x128xf32>
    %16 = arith.truncf %15 : vector<128x128xf32> to vector<128x128xbf16>
    %cst_11 = arith.constant dense<0.000000e+00> : vector<128x128xf32>
    %17 = tpu.matmul %0, %16, %cst_11 {dimension_numbers = #tpu.dot_dimension_numbers<[1], [0], [0], [1], [0, 0, 1, 1], [], []>} : vector<128x128xbf16>, vector<128x128xbf16>, vector<128x128xf32> -> vector<128x128xf32>
    %18 = vector.broadcast %1 : vector<128x1xf32> to vector<128x128xf32>
    %19 = arith.mulf %18, %17 : vector<128x128xf32>
    %c0_12 = arith.constant 0 : index
    %c0_13 = arith.constant 0 : index
    %20 = vector.load %arg5[%c0_12, %c0_13] : memref<1x128xf32, #tpu.memory_space<vmem>>, vector<1x128xf32>
    %21 = vector.broadcast %20 : vector<1x128xf32> to vector<128x128xf32>
    %22 = arith.addf %19, %21 : vector<128x128xf32>
    %c0_14 = arith.constant 0 : index
    %c0_15 = arith.constant 0 : index
    %23 = vector.load %arg6[%c0_14, %c0_15] : memref<128x128xf32, #tpu.memory_space<vmem>>, vector<128x128xf32>
    %cst_16 = arith.constant dense<0.000000e+00> : vector<128x128xf32>
    %24 = tpu.matmul %22, %23, %cst_16 {dimension_numbers = #tpu.dot_dimension_numbers<[1], [0], [0], [1], [0, 0, 1, 1], [], []>} : vector<128x128xf32>, vector<128x128xf32>, vector<128x128xf32> -> vector<128x128xf32>
    %c0_17 = arith.constant 0 : index
    %c0_18 = arith.constant 0 : index
    %25 = vector.load %arg7[%c0_17, %c0_18] : memref<1x128xf32, #tpu.memory_space<vmem>>, vector<1x128xf32>
    %26 = vector.broadcast %25 : vector<1x128xf32> to vector<128x128xf32>
    %27 = arith.addf %24, %26 : vector<128x128xf32>
    %cst_19 = arith.constant 0.000000e+00 : f32
    %28 = vector.broadcast %cst_19 : f32 to vector<128x128xf32>
    %29 = arith.maximumf %27, %28 : vector<128x128xf32>
    %30 = math.roundeven %29 : vector<128x128xf32>
    %c0_20 = arith.constant 0 : index
    %c0_21 = arith.constant 0 : index
    %31 = vector.load %arg8[%c0_20, %c0_21] : memref<128x128xf32, #tpu.memory_space<vmem>>, vector<128x128xf32>
    tpu.vector_store %arg8[%c0_20, %c0_21], %30 {strides = array<i32>} : memref<128x128xf32, #tpu.memory_space<vmem>>, vector<128x128xf32>,
    return
  }
}

</mosaic_0001>

<bundles_post_ra>
// kernel: tpu_custom_call.1
= control target key start
LH: loop header
LB: loop body
LE: loop exit
PB: predicated region body
PF: predicated region fallthrough
CT: control target
= control target key end

     0   :  { %13 = vsyncpa [#allocation3], 0  ;;  %s1487_s0 = inlined_call_operand.hbm [shape: bf16[128,128], index: 0, kind: input, shape index: {}]   ;;  %s1488_s1 = inlined_call_operand.hbm [shape: bf16[128,128], index: 1, kind: input, shape index: {}]   ;;  %s1489_s2 = inlined_call_operand.vmem [shape: f32[128,1], index: 2, kind: input, shape index: {}]   ;;  %s1490_s3 = inlined_call_operand.vmem [shape: f32[1,128], index: 3, kind: input, shape index: {}]   ;;  %s1491_s4 = inlined_call_operand.hbm [shape: bf16[128,128], index: 4, kind: input, shape index: {}]   ;;  %s1492_s5 = inlined_call_operand.vmem [shape: f32[1,128], index: 5, kind: input, shape index: {}]   ;;  %s1493_s6 = inlined_call_operand.vmem [shape: f32[128,128], index: 6, kind: input, shape index: {}]   ;;  %s1494_s7 = inlined_call_operand.vmem [shape: f32[1,128], index: 7, kind: input, shape index: {}]   ;;  %s1495_s8 = inlined_call_operand.hbm [shape: f32[128,128], index: 8, kind: output, shape index: {}]  }
   0x1   :  { %14 = vsyncpa [#allocation6], 0 }
   0x2   :  { %15 = vsyncpa [#allocation4], 0  ;;  %s33_s29 = sshll.u32 %s1488_s1, 4  ;;  %s1150_s30 = smov [#allocation5]   ;;  %s34_s29 = int_to_ptr.hbm [resolvable:$true] %s33_s29 }
   0x3   :  { %s35_s9 = sshll.u32 %s1150_s30, 4  ;;  %s20_s12 = sshll.u32 %s1487_s0, 4  ;;  %s36_s9 = int_to_ptr.vmem [resolvable:$true] %s35_s9  ;;  %s21_s12 = int_to_ptr.hbm [resolvable:$true] %s20_s12 }
   0x4   :  { %s1151_s13 = smov 64   ;;  %s1152_s14 = smov 4  }
   0x5   :  { %41 = dma.hbm_to_vmem [thread:$0]  %s34_s29, 1024, %s36_s9, [#allocation6], %s1151_s13, %s1151_s13, %s1152_s14  }
   0x6   :  { %s1153_s15 = smov [#allocation2]   ;;  %s50_s19 = sshll.u32 %s1491_s4, 4  ;;  %s51_s19 = int_to_ptr.hbm [resolvable:$true] %s50_s19 }
   0x7   :  { %s22_s16 = sshll.u32 %s1153_s15, 4  ;;  %s1154_s1 = smov [#allocation7]   ;;  %s23_s16 = int_to_ptr.vmem [resolvable:$true] %s22_s16 }
   0x8   :  { %28 = dma.hbm_to_vmem [thread:$0]  %s21_s12, 1024, %s23_s16, [#allocation3], %s1151_s13, %s1151_s13, %s1152_s14  }
   0x9   :  { %s52_s20 = sshll.u32 %s1154_s1, 4  ;;  %s53_s20 = int_to_ptr.vmem [resolvable:$true] %s52_s20 }
   0xa   :  { %58 = dma.hbm_to_vmem [thread:$0]  %s51_s19, 1024, %s53_s20, [#allocation6], %s1151_s13, %s1151_s13, %s1152_s14  }
   0xb   :  { %1144 = dma.done.wait [#allocation3], 1024  }
   0xc   :  { %1145 = vsyncadd [#allocation3], 4294966272 }
   0xd   :  { %1146 = dma.done.wait [#allocation6], 2048  }
   0xe   :  { %1147 = vsyncadd [#allocation6], 4294965248  ;;  %v1155_v0 = vmov 0   ;;  %v896_v1 = vld [vmem:[#allocation5 + $0x38] sm:$0xff]  ;;  %v93_v2 = vld [vmem:[%s1489_s2] sm:$0xff]  ;;  %s771_s14 = sshll.u32 %s1495_s8, 4  ;;  %s772_s14 = int_to_ptr.hbm [resolvable:$true] %s771_s14 }
   0xf   :  { %1042 = vset.pattern.permute.xlu0 %v1155_v0  ;;  %1043 = vset.pattern.permute.xlu1 %v1155_v0  ;;  %v895_v3 = vld [vmem:[#allocation5 + $0x30] sm:$0xff]  ;;  %v894_v5 = vld [vmem:[#allocation5 + $0x28] sm:$0xff]  ;;  %v96_v7 = vld [vmem:[%s1489_s2 + $0x18] sm:$0xff]  ;;  %s1157_s15 = smov 128   ;;  %s1158_s16 = smov 8  }
  0x10   :  { %1044 = vset.pattern.permute.xlu2 %v1155_v0  ;;  %272 = vperm.xlu0 %1042, %v93_v2   ;;  %v95_v4 = vld [vmem:[%s1489_s2 + $0x10] sm:$0xff]  ;;  %v94_v6 = vld [vmem:[%s1489_s2 + $0x8] sm:$0xff]  ;;  %v893_v8 = vld [vmem:[#allocation5 + $0x20] sm:$0xff] }
  0x11   :  { %221 = vmatpush.bf16.msra.mxu0 %v896_v1  ;;  %282 = vperm.xlu1 %1043, %v95_v4   ;;  %v892_v9 = vld [vmem:[#allocation5 + $0x18] sm:$0xff]  ;;  %v99_v10 = vld [vmem:[%s1489_s2 + $0x30] sm:$0xff]  ;;  %v890_v13 = vld [vmem:[#allocation5 + $0x8] sm:$0xff] }
  0x12   :  { %v100_v11 = vld [vmem:[%s1489_s2 + $0x38] sm:$0xff]  ;;  %v891_v12 = vld [vmem:[#allocation5 + $0x10] sm:$0xff]  ;;  %v102_v14 = vld [vmem:[%s1489_s2 + $0x48] sm:$0xff] }
  0x13   :  { %v103_v15 = vld [vmem:[%s1489_s2 + $0x50] sm:$0xff]  ;;  %v889_v16 = vld [vmem:[#allocation5] sm:$0xff]  ;;  %v106_v19 = vld [vmem:[%s1489_s2 + $0x68] sm:$0xff] }
  0x14   :  { %v1237_v17 = vld [vmem:[#allocation2] sm:$0xff]  ;;  %v108_v21 = vld [vmem:[%s1489_s2 + $0x78] sm:$0xff]  ;;  %v98_v22 = vld [vmem:[%s1489_s2 + $0x28] sm:$0xff] }
  0x15   :  { %222 = vmatpush.bf16.msra.mxu0 %v895_v3  ;;  %v105_v18 = vld [vmem:[%s1489_s2 + $0x60] sm:$0xff]  ;;  %v1255_v23 = vld [vmem:[#allocation2 + $0x8] sm:$0xff]  ;;  %v104_v25 = vld [vmem:[%s1489_s2 + $0x58] sm:$0xff] }
  0x16   :  { %v97_v20 = vld [vmem:[%s1489_s2 + $0x20] sm:$0xff]  ;;  %v1264_v26 = vld [vmem:[#allocation2 + $0x10] sm:$0xff]  ;;  %v1270_v28 = vld [vmem:[#allocation2 + $0x18] sm:$0xff] }
  0x17   :  { %292 = vperm.xlu2 %1044, %v97_v20   ;;  %v101_v24 = vld [vmem:[%s1489_s2 + $0x40] sm:$0xff]  ;;  %v107_v27 = vld [vmem:[%s1489_s2 + $0x70] sm:$0xff]  ;;  %v1276_v30 = vld [vmem:[#allocation2 + $0x28] sm:$0xff] }
  0x18   :  { %277 = vperm.xlu0 %1042, %v94_v6   ;;  %v1273_v29 = vld [vmem:[#allocation2 + $0x20] sm:$0xff]  ;;  %v904_v31 = vld [vmem:[#allocation7 + $0x38] sm:$0xff]  ;;  %v903_v32 = vld [vmem:[#allocation7 + $0x30] sm:$0xff] }
  0x19   :  { %223 = vmatpush.bf16.msra.mxu0 %v894_v5  ;;  %287 = vperm.xlu1 %1043, %v96_v7   ;;  %v902_v33 = vld [vmem:[#allocation7 + $0x28] sm:$0xff]  ;;  %v901_v34 = vld [vmem:[#allocation7 + $0x20] sm:$0xff]  ;;  %v1279_v35 = vld [vmem:[#allocation2 + $0x30] sm:$0xff] }
  0x1a   :  { %490 = vmatpush.bf16.msra.mxu1 %v904_v31  ;;  %v900_v36 = vld [vmem:[#allocation7 + $0x18] sm:$0xff]  ;;  %v899_v37 = vld [vmem:[#allocation7 + $0x10] sm:$0xff]  ;;  %v898_v38 = vld [vmem:[#allocation7 + $0x8] sm:$0xff] }
  0x1b   :  { %v897_v39 = vld [vmem:[#allocation7] sm:$0xff]  ;;  %v1282_v40 = vld [vmem:[#allocation2 + $0x38] sm:$0xff] }
  0x1c   :  { %v1291_v44 = vld [vmem:[%s1490_s3] ss:$0 sm:$0xff] }
  0x1d   :  { %224 = vmatpush.bf16.msra.mxu0 %v893_v8 }
  0x1e   :  { %491 = vmatpush.bf16.msra.mxu1 %v903_v32 }
  0x1f   :  { %297 = vperm.xlu2 %1044, %v98_v22  }
  0x20   :  { %302 = vperm.xlu0 %1042, %v99_v10  }
  0x21   :  { %225 = vmatpush.bf16.msra.mxu0 %v892_v9  ;;  %307 = vperm.xlu1 %1043, %v100_v11  }
  0x22   :  { %492 = vmatpush.bf16.msra.mxu1 %v902_v33 }
  0x25   :  { %226 = vmatpush.bf16.msra.mxu0 %v891_v12 }
  0x26   :  { %493 = vmatpush.bf16.msra.mxu1 %v901_v34 }
  0x27   :  { %312 = vperm.xlu2 %1044, %v101_v24  }
  0x28   :  { %317 = vperm.xlu0 %1042, %v102_v14  }
  0x29   :  { %227 = vmatpush.bf16.msra.mxu0 %v890_v13  ;;  %322 = vperm.xlu1 %1043, %v103_v15  }
  0x2a   :  { %494 = vmatpush.bf16.msra.mxu1 %v900_v36 }
  0x2d   :  { %228 = vmatpush.bf16.msra.mxu0 %v889_v16 }
  0x2e   :  { %495 = vmatpush.bf16.msra.mxu1 %v899_v37 }
  0x2f   :  { %327 = vperm.xlu2 %1044, %v104_v25  }
  0x30   :  { %229 = vmatmul.bf16.vlgmr.msra.gmra.mxu0 %v1237_v17  ;;  %332 = vperm.xlu0 %1042, %v105_v18  }
  0x31   :  { %337 = vperm.xlu1 %1043, %v106_v19  }
  0x32   :  { %496 = vmatpush.bf16.msra.mxu1 %v898_v38 }
  0x36   :  { %497 = vmatpush.bf16.msra.mxu1 %v897_v39 }
  0x37   :  { %342 = vperm.xlu2 %1044, %v107_v27  }
  0x38   :  { %347 = vperm.xlu0 %1042, %v108_v21  }
  0x40   :  { %234 = vmatmul.bf16.gmra.mxu0 %v1255_v23 }
  0x50   :  { %239 = vmatmul.bf16.gmra.mxu0 %v1264_v26 }
  0x60   :  { %244 = vmatmul.bf16.gmra.mxu0 %v1270_v28 }
  0x70   :  { %249 = vmatmul.bf16.gmra.mxu0 %v1273_v29 }
  0x71   :  { %v1308_v1 = vpop.permute.xlu2 %292 }
  0x79   :  { %v1314_v8 = vpop.permute.xlu2 %297 }
  0x80   :  { %254 = vmatmul.bf16.gmra.mxu0 %v1276_v30 }
  0x81   :  { %v1330_v38 = vpop.permute.xlu2 %312 }
  0x82   :  { %v1285_v41 = vpop.permute.xlu0 %272 }
  0x83   :  { %v1298_v52 = vpop.permute.xlu1 %282 }
  0x8a   :  { %v1294_v46 = vpop.permute.xlu0 %277 }
  0x8b   :  { %v1304_v59 = vpop.permute.xlu1 %287 }
  0x90   :  { %259 = vmatmul.bf16.gmra.mxu0 %v1279_v35 }
  0x92   :  { %v1320_v19 = vpop.permute.xlu0 %302 }
  0x93   :  { %v1324_v22 = vpop.permute.xlu1 %307 }
  0xa0   :  { %264 = vmatmul.bf16.gmra.mxu0 %v1282_v40 }
  0xad   :  { %v230_v42 = vpop.f32.mrf.mxu0 }
  0xae   :  { %v350_v43 = vmul.f32 %v1285_v41, %v230_v42 }
  0xb0   :  { %v370_v45 = vadd.f32 %v1291_v44, %v350_v43  ;;  %v1334_v43 = vpop.permute.xlu0 %317 }
  0xb2   :  { %v386_v49 = vmax.f32 %v370_v45, 0.0 }
  0xb4   :  { %v402_v53 = vmul.f32 %v386_v49, %v1285_v41 }
  0xb5   :  { %v232_v47 = vpop.f32.mrf.mxu0 }
  0xb6   :  { %v351_v48 = vmul.f32 %v1294_v46, %v232_v47 }
  0xb8   :  { %v371_v50 = vadd.f32 %v1291_v44, %v351_v48 }
  0xba   :  { %v387_v51 = vmax.f32 %v371_v50, 0.0 }
  0xbc   :  { %v403_v54 = vmul.f32 %v387_v51, %v1294_v46 }
  0xbd   :  { %v235_v55 = vpop.f32.mrf.mxu0 }
  0xbe   :  { %v418_v56 = vpack.c.bf16 %v403_v54, %v402_v53  ;;  %v352_v57 = vmul.f32 %v1298_v52, %v235_v55 }
  0xc0   :  { %498 = vmatmul.bf16.vlgmr.msra.gmra.mxu1 %v418_v56  ;;  %v372_v58 = vadd.f32 %v1291_v44, %v352_v57  ;;  %v1340_v56 = vpop.permute.xlu1 %322 }
  0xc2   :  { %v388_v62 = vmax.f32 %v372_v58, 0.0 }
  0xc4   :  { %v404_v2 = vmul.f32 %v388_v62, %v1298_v52 }
  0xc5   :  { %v237_v60 = vpop.f32.mrf.mxu0 }
  0xc6   :  { %v353_v61 = vmul.f32 %v1304_v59, %v237_v60  ;;  %v1344_v60 = vpop.permute.xlu2 %327 }
  0xc8   :  { %v373_v63 = vadd.f32 %v1291_v44, %v353_v61 }
  0xca   :  { %v389_v0 = vmax.f32 %v373_v63, 0.0 }
  0xcc   :  { %v405_v3 = vmul.f32 %v389_v0, %v1304_v59 }
  0xcd   :  { %v240_v4 = vpop.f32.mrf.mxu0 }
  0xce   :  { %v419_v5 = vpack.c.bf16 %v405_v3, %v404_v2  ;;  %v354_v6 = vmul.f32 %v1308_v1, %v240_v4 }
  0xd0   :  { %503 = vmatmul.bf16.gmra.mxu1 %v419_v5  ;;  %v374_v7 = vadd.f32 %v1291_v44, %v354_v6 }
  0xd2   :  { %v390_v11 = vmax.f32 %v374_v7, 0.0  ;;  %v1350_v7 = vpop.permute.xlu0 %332 }
  0xd4   :  { %v406_v14 = vmul.f32 %v390_v11, %v1308_v1  ;;  %v1354_v11 = vpop.permute.xlu1 %337 }
  0xd5   :  { %v242_v9 = vpop.f32.mrf.mxu0 }
  0xd6   :  { %v355_v10 = vmul.f32 %v1314_v8, %v242_v9 }
  0xd8   :  { %v375_v12 = vadd.f32 %v1291_v44, %v355_v10 }
  0xda   :  { %v391_v13 = vmax.f32 %v375_v12, 0.0 }
  0xdc   :  { %v407_v15 = vmul.f32 %v391_v13, %v1314_v8 }
  0xdd   :  { %v245_v16 = vpop.f32.mrf.mxu0 }
  0xde   :  { %v420_v18 = vpack.c.bf16 %v407_v15, %v406_v14  ;;  %v356_v20 = vmul.f32 %v1320_v19, %v245_v16 }
  0xe0   :  { %508 = vmatmul.bf16.gmra.mxu1 %v420_v18  ;;  %v376_v21 = vadd.f32 %v1291_v44, %v356_v20 }
  0xe2   :  { %v392_v27 = vmax.f32 %v376_v21, 0.0 }
  0xe4   :  { %v408_v33 = vmul.f32 %v392_v27, %v1320_v19 }
  0xe5   :  { %v247_v24 = vpop.f32.mrf.mxu0 }
  0xe6   :  { %v357_v25 = vmul.f32 %v1324_v22, %v247_v24 }
  0xe8   :  { %v377_v31 = vadd.f32 %v1291_v44, %v357_v25  ;;  %v1360_v25 = vpop.permute.xlu2 %342 }
  0xea   :  { %v393_v32 = vmax.f32 %v377_v31, 0.0 }
  0xec   :  { %v409_v34 = vmul.f32 %v393_v32, %v1324_v22  ;;  %v1364_v32 = vpop.permute.xlu0 %347 }
  0xed   :  { %v250_v36 = vpop.f32.mrf.mxu0 }
  0xee   :  { %v421_v37 = vpack.c.bf16 %v409_v34, %v408_v33  ;;  %v358_v39 = vmul.f32 %v1330_v38, %v250_v36 }
  0xf0   :  { %513 = vmatmul.bf16.gmra.mxu1 %v421_v37  ;;  %v378_v42 = vadd.f32 %v1291_v44, %v358_v39 }
  0xf2   :  { %v394_v48 = vmax.f32 %v378_v42, 0.0 }
  0xf4   :  { %v410_v51 = vmul.f32 %v394_v48, %v1330_v38 }
  0xf5   :  { %v252_v45 = vpop.f32.mrf.mxu0 }
  0xf6   :  { %v359_v47 = vmul.f32 %v1334_v43, %v252_v45 }
  0xf8   :  { %v379_v49 = vadd.f32 %v1291_v44, %v359_v47 }
  0xfa   :  { %v395_v50 = vmax.f32 %v379_v49, 0.0 }
  0xfc   :  { %v411_v53 = vmul.f32 %v395_v50, %v1334_v43 }
  0xfd   :  { %v255_v54 = vpop.f32.mrf.mxu0 }
  0xfe   :  { %v422_v55 = vpack.c.bf16 %v411_v53, %v410_v51  ;;  %v360_v57 = vmul.f32 %v1340_v56, %v255_v54 }
 0x100   :  { %518 = vmatmul.bf16.gmra.mxu1 %v422_v55  ;;  %v380_v58 = vadd.f32 %v1291_v44, %v360_v57 }
 0x102   :  { %v396_v63 = vmax.f32 %v380_v58, 0.0 }
 0x104   :  { %v412_v3 = vmul.f32 %v396_v63, %v1340_v56 }
 0x105   :  { %v257_v61 = vpop.f32.mrf.mxu0 }
 0x106   :  { %v361_v62 = vmul.f32 %v1344_v60, %v257_v61 }
 0x108   :  { %v381_v0 = vadd.f32 %v1291_v44, %v361_v62 }
 0x10a   :  { %v397_v2 = vmax.f32 %v381_v0, 0.0 }
 0x10c   :  { %v413_v4 = vmul.f32 %v397_v2, %v1344_v60 }
 0x10d   :  { %v260_v5 = vpop.f32.mrf.mxu0 }
 0x10e   :  { %v423_v6 = vpack.c.bf16 %v413_v4, %v412_v3  ;;  %v362_v9 = vmul.f32 %v1350_v7, %v260_v5 }
 0x110   :  { %523 = vmatmul.bf16.gmra.mxu1 %v423_v6  ;;  %v382_v10 = vadd.f32 %v1291_v44, %v362_v9 }
 0x112   :  { %v398_v14 = vmax.f32 %v382_v10, 0.0 }
 0x114   :  { %v414_v18 = vmul.f32 %v398_v14, %v1350_v7 }
 0x115   :  { %v262_v12 = vpop.f32.mrf.mxu0 }
 0x116   :  { %v363_v13 = vmul.f32 %v1354_v11, %v262_v12 }
 0x118   :  { %v383_v15 = vadd.f32 %v1291_v44, %v363_v13 }
 0x11a   :  { %v399_v16 = vmax.f32 %v383_v15, 0.0  ;;  %v647_v15 = vld [vmem:[%s1493_s6 + $0x78] sm:$0xff] }
 0x11b   :  { %652 = vmatpush.msra.mxu3 %v647_v15 }
 0x11c   :  { %v415_v20 = vmul.f32 %v399_v16, %v1354_v11  ;;  %v646_v16 = vld [vmem:[%s1493_s6 + $0x70] sm:$0xff] }
 0x11d   :  { %v265_v21 = vpop.f32.mrf.mxu0  ;;  %653 = vmatpush.msra.mxu3 %v646_v16 }
 0x11e   :  { %v424_v24 = vpack.c.bf16 %v415_v20, %v414_v18  ;;  %v364_v27 = vmul.f32 %v1360_v25, %v265_v21  ;;  %v640_v18 = vld [vmem:[%s1493_s6 + $0x40] sm:$0xff]  ;;  %v638_v20 = vld [vmem:[%s1493_s6 + $0x30] sm:$0xff]  ;;  %v637_v21 = vld [vmem:[%s1493_s6 + $0x28] sm:$0xff] }
 0x120   :  { %528 = vmatmul.bf16.gmra.mxu1 %v424_v24  ;;  %v384_v31 = vadd.f32 %v1291_v44, %v364_v27  ;;  %v636_v24 = vld [vmem:[%s1493_s6 + $0x20] sm:$0xff]  ;;  %v635_v27 = vld [vmem:[%s1493_s6 + $0x18] sm:$0xff] }
 0x122   :  { %v400_v36 = vmax.f32 %v384_v31, 0.0  ;;  %v634_v31 = vld [vmem:[%s1493_s6 + $0x10] sm:$0xff] }
 0x124   :  { %v416_v42 = vmul.f32 %v400_v36, %v1360_v25 }
 0x125   :  { %v267_v33 = vpop.f32.mrf.mxu0 }
 0x126   :  { %v365_v34 = vmul.f32 %v1364_v32, %v267_v33  ;;  %v633_v33 = vld [vmem:[%s1493_s6 + $0x8] sm:$0xff] }
 0x128   :  { %v385_v37 = vadd.f32 %v1291_v44, %v365_v34  ;;  %v632_v34 = vld [vmem:[%s1493_s6] sm:$0xff] }
 0x12a   :  { %v401_v39 = vmax.f32 %v385_v37, 0.0 }
 0x12c   :  { %v417_v45 = vmul.f32 %v401_v39, %v1364_v32 }
 0x12e   :  { %v425_v47 = vpack.c.bf16 %v417_v45, %v416_v42 }
 0x130   :  { %533 = vmatmul.bf16.gmra.mxu1 %v425_v47 }
 0x13d   :  { %v499_v48 = vpop.f32.mrf.mxu1 }
 0x145   :  { %v501_v49 = vpop.f32.mrf.mxu1 }
 0x146   :  { %v539_v50 = vpack.c.bf16 %v501_v49, %v499_v48 }
 0x14d   :  { %v504_v51 = vpop.f32.mrf.mxu1 }
 0x155   :  { %v506_v53 = vpop.f32.mrf.mxu1 }
 0x156   :  { %v540_v54 = vpack.c.bf16 %v506_v53, %v504_v51 }
 0x15d   :  { %v509_v55 = vpop.f32.mrf.mxu1 }
 0x165   :  { %v511_v57 = vpop.f32.mrf.mxu1 }
 0x166   :  { %v541_v58 = vpack.c.bf16 %v511_v57, %v509_v55 }
 0x16d   :  { %v514_v61 = vpop.f32.mrf.mxu1 }
 0x175   :  { %v516_v62 = vpop.f32.mrf.mxu1 }
 0x176   :  { %v542_v63 = vpack.c.bf16 %v516_v62, %v514_v61 }
 0x17d   :  { %v519_v44 = vpop.f32.mrf.mxu1 }
 0x185   :  { %v521_v0 = vpop.f32.mrf.mxu1 }
 0x186   :  { %v543_v14 = vpack.c.bf16 %v521_v0, %v519_v44 }
 0x18d   :  { %v524_v2 = vpop.f32.mrf.mxu1 }
 0x195   :  { %v526_v3 = vpop.f32.mrf.mxu1 }
 0x196   :  { %v544_v13 = vpack.c.bf16 %v526_v3, %v524_v2 }
 0x19d   :  { %v529_v4 = vpop.f32.mrf.mxu1 }
 0x1a5   :  { %v531_v5 = vpop.f32.mrf.mxu1 }
 0x1a6   :  { %v545_v12 = vpack.c.bf16 %v531_v5, %v529_v4 }
 0x1ad   :  { %v534_v6 = vpop.f32.mrf.mxu1 }
 0x1b5   :  { %v536_v9 = vpop.f32.mrf.mxu1 }
 0x1b6   :  { %v546_v10 = vpack.c.bf16 %v536_v9, %v534_v6 }
 0x1b8   :  { %547 = vmatpush.bf16.msra.mxu2 %v546_v10 }
 0x1bc   :  { %548 = vmatpush.bf16.msra.mxu2 %v545_v12 }
 0x1c0   :  { %549 = vmatpush.bf16.msra.mxu2 %v544_v13 }
 0x1c4   :  { %550 = vmatpush.bf16.msra.mxu2 %v543_v14 }
 0x1c8   :  { %551 = vmatpush.bf16.msra.mxu2 %v542_v63 }
 0x1cc   :  { %552 = vmatpush.bf16.msra.mxu2 %v541_v58 }
 0x1d0   :  { %553 = vmatpush.bf16.msra.mxu2 %v540_v54 }
 0x1d4   :  { %554 = vmatpush.bf16.msra.mxu2 %v539_v50 }
 0x1d7   :  { %555 = vmatmul.bf16.vlgmr.msra.gmra.mxu2 %v1237_v17  ;;  %v645_v17 = vld [vmem:[%s1493_s6 + $0x68] sm:$0xff] }
 0x1d8   :  { %654 = vmatpush.msra.mxu3 %v645_v17 }
 0x1e7   :  { %560 = vmatmul.bf16.gmra.mxu2 %v1255_v23  ;;  %v644_v23 = vld [vmem:[%s1493_s6 + $0x60] sm:$0xff] }
 0x1e8   :  { %655 = vmatpush.msra.mxu3 %v644_v23 }
 0x1f7   :  { %565 = vmatmul.bf16.gmra.mxu2 %v1264_v26  ;;  %v643_v26 = vld [vmem:[%s1493_s6 + $0x58] sm:$0xff] }
 0x1f8   :  { %656 = vmatpush.msra.mxu3 %v643_v26  ;;  %v1466_v26 = vld [vmem:[%s1494_s7] ss:$0 sm:$0xff]  ;;  %s1156_s7 = smov [#allocation8]  }
 0x1f9   :  { %s769_s11 = sshll.u32 %s1156_s7, 4  ;;  %s770_s11 = int_to_ptr.vmem [resolvable:$true] %s769_s11 }
 0x207   :  { %570 = vmatmul.bf16.gmra.mxu2 %v1270_v28  ;;  %v642_v28 = vld [vmem:[%s1493_s6 + $0x50] sm:$0xff] }
 0x208   :  { %657 = vmatpush.msra.mxu3 %v642_v28 }
 0x217   :  { %575 = vmatmul.bf16.gmra.mxu2 %v1273_v29  ;;  %v641_v29 = vld [vmem:[%s1493_s6 + $0x48] sm:$0xff] }
 0x218   :  { %658 = vmatpush.msra.mxu3 %v641_v29 }
 0x21a   :  { %659 = vmatpush.msra.mxu3 %v640_v18 }
 0x227   :  { %580 = vmatmul.bf16.gmra.mxu2 %v1276_v30  ;;  %v639_v30 = vld [vmem:[%s1493_s6 + $0x38] sm:$0xff] }
 0x228   :  { %660 = vmatpush.msra.mxu3 %v639_v30 }
 0x22a   :  { %661 = vmatpush.msra.mxu3 %v638_v20 }
 0x22c   :  { %662 = vmatpush.msra.mxu3 %v637_v21 }
 0x22e   :  { %663 = vmatpush.msra.mxu3 %v636_v24 }
 0x230   :  { %664 = vmatpush.msra.mxu3 %v635_v27 }
 0x232   :  { %665 = vmatpush.msra.mxu3 %v634_v31 }
 0x234   :  { %666 = vmatpush.msra.mxu3 %v633_v33 }
 0x236   :  { %667 = vmatpush.msra.mxu3 %v632_v34 }
 0x237   :  { %585 = vmatmul.bf16.gmra.mxu2 %v1279_v35  ;;  %v1429_v35 = vld [vmem:[%s1492_s5] ss:$0 sm:$0xff] }
 0x247   :  { %590 = vmatmul.bf16.gmra.mxu2 %v1282_v40 }
 0x25a   :  { %v556_v36 = vpop.f32.mrf.mxu2 }
 0x25b   :  { %v596_v37 = vmul.f32 %v556_v36, %v1285_v41 }
 0x25d   :  { %v616_v39 = vadd.f32 %v1429_v35, %v596_v37 }
 0x25f   :  { %668 = vmatmul.f32.vlgmr.msra.gmra.mxu3 %v616_v39 }
 0x262   :  { %v558_v42 = vpop.f32.mrf.mxu2 }
 0x263   :  { %v597_v45 = vmul.f32 %v558_v42, %v1294_v46 }
 0x265   :  { %v617_v47 = vadd.f32 %v1429_v35, %v597_v45 }
 0x267   :  { %671 = vmatmul.f32.gmra.mxu3 %v617_v47 }
 0x26a   :  { %v561_v48 = vpop.f32.mrf.mxu2 }
 0x26b   :  { %v598_v40 = vmul.f32 %v561_v48, %v1298_v52 }
 0x26d   :  { %v618_v49 = vadd.f32 %v1429_v35, %v598_v40 }
 0x26f   :  { %674 = vmatmul.f32.gmra.mxu3 %v618_v49 }
 0x272   :  { %v563_v50 = vpop.f32.mrf.mxu2 }
 0x273   :  { %v599_v51 = vmul.f32 %v563_v50, %v1304_v59 }
 0x275   :  { %v619_v41 = vadd.f32 %v1429_v35, %v599_v51 }
 0x277   :  { %677 = vmatmul.f32.gmra.mxu3 %v619_v41 }
 0x27a   :  { %v566_v53 = vpop.f32.mrf.mxu2 }
 0x27b   :  { %v600_v54 = vmul.f32 %v566_v53, %v1308_v1 }
 0x27d   :  { %v620_v46 = vadd.f32 %v1429_v35, %v600_v54 }
 0x27f   :  { %680 = vmatmul.f32.gmra.mxu3 %v620_v46 }
 0x282   :  { %v568_v55 = vpop.f32.mrf.mxu2 }
 0x283   :  { %v601_v57 = vmul.f32 %v568_v55, %v1314_v8 }
 0x285   :  { %v621_v52 = vadd.f32 %v1429_v35, %v601_v57 }
 0x287   :  { %683 = vmatmul.f32.gmra.mxu3 %v621_v52 }
 0x28a   :  { %v571_v58 = vpop.f32.mrf.mxu2 }
 0x28b   :  { %v602_v61 = vmul.f32 %v571_v58, %v1320_v19 }
 0x28d   :  { %v622_v59 = vadd.f32 %v1429_v35, %v602_v61 }
 0x28f   :  { %686 = vmatmul.f32.gmra.mxu3 %v622_v59 }
 0x292   :  { %v573_v62 = vpop.f32.mrf.mxu2 }
 0x293   :  { %v603_v63 = vmul.f32 %v573_v62, %v1324_v22 }
 0x295   :  { %v623_v1 = vadd.f32 %v1429_v35, %v603_v63 }
 0x297   :  { %689 = vmatmul.f32.gmra.mxu3 %v623_v1 }
 0x29a   :  { %v576_v44 = vpop.f32.mrf.mxu2 }
 0x29b   :  { %v604_v0 = vmul.f32 %v576_v44, %v1330_v38 }
 0x29d   :  { %v624_v8 = vadd.f32 %v1429_v35, %v604_v0 }
 0x29f   :  { %692 = vmatmul.f32.gmra.mxu3 %v624_v8 }
 0x2a2   :  { %v578_v2 = vpop.f32.mrf.mxu2 }
 0x2a3   :  { %v605_v3 = vmul.f32 %v578_v2, %v1334_v43 }
 0x2a5   :  { %v625_v19 = vadd.f32 %v1429_v35, %v605_v3 }
 0x2a7   :  { %695 = vmatmul.f32.gmra.mxu3 %v625_v19 }
 0x2aa   :  { %v581_v4 = vpop.f32.mrf.mxu2 }
 0x2ab   :  { %v606_v5 = vmul.f32 %v581_v4, %v1340_v56 }
 0x2ad   :  { %v626_v22 = vadd.f32 %v1429_v35, %v606_v5 }
 0x2af   :  { %698 = vmatmul.f32.gmra.mxu3 %v626_v22 }
 0x2b2   :  { %v583_v6 = vpop.f32.mrf.mxu2 }
 0x2b3   :  { %v607_v9 = vmul.f32 %v583_v6, %v1344_v60 }
 0x2b5   :  { %v627_v38 = vadd.f32 %v1429_v35, %v607_v9 }
 0x2b7   :  { %701 = vmatmul.f32.gmra.mxu3 %v627_v38 }
 0x2ba   :  { %v586_v10 = vpop.f32.mrf.mxu2 }
 0x2bb   :  { %v608_v12 = vmul.f32 %v586_v10, %v1350_v7 }
 0x2bd   :  { %v628_v43 = vadd.f32 %v1429_v35, %v608_v12 }
 0x2bf   :  { %704 = vmatmul.f32.gmra.mxu3 %v628_v43 }
 0x2c2   :  { %v588_v13 = vpop.f32.mrf.mxu2 }
 0x2c3   :  { %v609_v14 = vmul.f32 %v588_v13, %v1354_v11 }
 0x2c5   :  { %v629_v56 = vadd.f32 %v1429_v35, %v609_v14 }
 0x2c7   :  { %707 = vmatmul.f32.gmra.mxu3 %v629_v56 }
 0x2ca   :  { %v591_v15 = vpop.f32.mrf.mxu2 }
 0x2cb   :  { %v610_v16 = vmul.f32 %v591_v15, %v1360_v25 }
 0x2cd   :  { %v630_v60 = vadd.f32 %v1429_v35, %v610_v16 }
 0x2cf   :  { %710 = vmatmul.f32.gmra.mxu3 %v630_v60 }
 0x2d2   :  { %v593_v17 = vpop.f32.mrf.mxu2 }
 0x2d3   :  { %v611_v23 = vmul.f32 %v593_v17, %v1364_v32 }
 0x2d5   :  { %v631_v7 = vadd.f32 %v1429_v35, %v611_v23 }
 0x2d7   :  { %713 = vmatmul.f32.gmra.mxu3 %v631_v7 }
 0x2e2   :  { %v669_v11 = vpop.f32.mrf.mxu3 }
 0x2e3   :  { %v670_v28 = vadd.f32 %v1466_v26, %v669_v11 }
 0x2e5   :  { %v717_v29 = vmax.f32 %v670_v28, 0.0 }
 0x2e7   :  { %v907_v18 = vcvt.f32.s32 %v717_v29  ;;  %v905_v30 = vand.u32 2147483647, %v717_v29  ;;  %v910_v24 = vand.u32 2147483648, %v717_v29 }
 0x2e9   :  { %v908_v25 = vcvt.s32.f32 %v907_v18  ;;  %vm906_vm0 = vcmp.lt.f32.partialorder %v905_v30, 8388608.0 }
 0x2ea   :  { %v672_v20 = vpop.f32.mrf.mxu3 }
 0x2eb   :  { %v909_v21 = vand.u32 2147483647, %v908_v25  ;;  %v673_v32 = vadd.f32 %v1466_v26, %v672_v20 }
 0x2ed   :  { %v911_v27 = vor.u32 %v910_v24, %v909_v21  ;;  %v718_v31 = vmax.f32 %v673_v32, 0.0 }
 0x2ef   :  { %v912_v33 = vsel %vm906_vm0, %v911_v27, %v717_v29  ;;  %v915_v34 = vcvt.f32.s32 %v718_v31  ;;  %v913_v36 = vand.u32 2147483647, %v718_v31  ;;  %v918_v42 = vand.u32 2147483648, %v718_v31 }
 0x2f0   :  { %749 = vst [vmem:[#allocation8] sm:$0xff] %v912_v33 }
 0x2f1   :  { %v916_v35 = vcvt.s32.f32 %v915_v34  ;;  %vm914_vm1 = vcmp.lt.f32.partialorder %v913_v36, 8388608.0 }
 0x2f2   :  { %v675_v37 = vpop.f32.mrf.mxu3 }
 0x2f3   :  { %v917_v39 = vand.u32 2147483647, %v916_v35  ;;  %v676_v45 = vadd.f32 %v1466_v26, %v675_v37 }
 0x2f5   :  { %v919_v47 = vor.u32 %v918_v42, %v917_v39  ;;  %v719_v48 = vmax.f32 %v676_v45, 0.0 }
 0x2f7   :  { %v920_v40 = vsel %vm914_vm1, %v919_v47, %v718_v31  ;;  %v923_v49 = vcvt.f32.s32 %v719_v48  ;;  %v921_v51 = vand.u32 2147483647, %v719_v48  ;;  %v926_v54 = vand.u32 2147483648, %v719_v48 }
 0x2f8   :  { %750 = vst [vmem:[#allocation8 + $0x8] sm:$0xff] %v920_v40 }
 0x2f9   :  { %v924_v50 = vcvt.s32.f32 %v923_v49  ;;  %vm922_vm2 = vcmp.lt.f32.partialorder %v921_v51, 8388608.0 }
 0x2fa   :  { %v678_v41 = vpop.f32.mrf.mxu3 }
 0x2fb   :  { %v925_v53 = vand.u32 2147483647, %v924_v50  ;;  %v679_v46 = vadd.f32 %v1466_v26, %v678_v41 }
 0x2fd   :  { %v927_v55 = vor.u32 %v926_v54, %v925_v53  ;;  %v720_v57 = vmax.f32 %v679_v46, 0.0 }
 0x2ff   :  { %v928_v52 = vsel %vm922_vm2, %v927_v55, %v719_v48  ;;  %v931_v58 = vcvt.f32.s32 %v720_v57  ;;  %v929_v59 = vand.u32 2147483647, %v720_v57  ;;  %v934_v1 = vand.u32 2147483648, %v720_v57 }
 0x300   :  { %751 = vst [vmem:[#allocation8 + $0x10] sm:$0xff] %v928_v52 }
 0x301   :  { %v932_v61 = vcvt.s32.f32 %v931_v58  ;;  %vm930_vm3 = vcmp.lt.f32.partialorder %v929_v59, 8388608.0 }
 0x302   :  { %v681_v62 = vpop.f32.mrf.mxu3 }
 0x303   :  { %v933_v63 = vand.u32 2147483647, %v932_v61  ;;  %v682_v44 = vadd.f32 %v1466_v26, %v681_v62 }
 0x305   :  { %v935_v0 = vor.u32 %v934_v1, %v933_v63  ;;  %v721_v8 = vmax.f32 %v682_v44, 0.0 }
 0x307   :  { %v936_v2 = vsel %vm930_vm3, %v935_v0, %v720_v57  ;;  %v939_v3 = vcvt.f32.s32 %v721_v8  ;;  %v937_v4 = vand.u32 2147483647, %v721_v8  ;;  %v942_v6 = vand.u32 2147483648, %v721_v8 }
 0x308   :  { %752 = vst [vmem:[#allocation8 + $0x18] sm:$0xff] %v936_v2 }
 0x309   :  { %v940_v19 = vcvt.s32.f32 %v939_v3  ;;  %vm938_vm4 = vcmp.lt.f32.partialorder %v937_v4, 8388608.0 }
 0x30a   :  { %v684_v5 = vpop.f32.mrf.mxu3 }
 0x30b   :  { %v941_v22 = vand.u32 2147483647, %v940_v19  ;;  %v685_v9 = vadd.f32 %v1466_v26, %v684_v5 }
 0x30d   :  { %v943_v38 = vor.u32 %v942_v6, %v941_v22  ;;  %v722_v10 = vmax.f32 %v685_v9, 0.0 }
 0x30f   :  { %v944_v12 = vsel %vm938_vm4, %v943_v38, %v721_v8  ;;  %v947_v43 = vcvt.f32.s32 %v722_v10  ;;  %v945_v14 = vand.u32 2147483647, %v722_v10  ;;  %v950_v16 = vand.u32 2147483648, %v722_v10 }
 0x310   :  { %753 = vst [vmem:[#allocation8 + $0x20] sm:$0xff] %v944_v12 }
 0x311   :  { %v948_v13 = vcvt.s32.f32 %v947_v43  ;;  %vm946_vm5 = vcmp.lt.f32.partialorder %v945_v14, 8388608.0 }
 0x312   :  { %v687_v56 = vpop.f32.mrf.mxu3 }
 0x313   :  { %v949_v15 = vand.u32 2147483647, %v948_v13  ;;  %v688_v60 = vadd.f32 %v1466_v26, %v687_v56 }
 0x315   :  { %v951_v17 = vor.u32 %v950_v16, %v949_v15  ;;  %v723_v23 = vmax.f32 %v688_v60, 0.0 }
 0x317   :  { %v952_v7 = vsel %vm946_vm5, %v951_v17, %v722_v10  ;;  %v955_v11 = vcvt.f32.s32 %v723_v23  ;;  %v953_v29 = vand.u32 2147483647, %v723_v23  ;;  %v958_v30 = vand.u32 2147483648, %v723_v23 }
 0x318   :  { %754 = vst [vmem:[#allocation8 + $0x28] sm:$0xff] %v952_v7 }
 0x319   :  { %v956_v28 = vcvt.s32.f32 %v955_v11  ;;  %vm954_vm6 = vcmp.lt.f32.partialorder %v953_v29, 8388608.0 }
 0x31a   :  { %v690_v18 = vpop.f32.mrf.mxu3 }
 0x31b   :  { %v957_v25 = vand.u32 2147483647, %v956_v28  ;;  %v691_v20 = vadd.f32 %v1466_v26, %v690_v18 }
 0x31d   :  { %v959_v21 = vor.u32 %v958_v30, %v957_v25  ;;  %v724_v24 = vmax.f32 %v691_v20, 0.0 }
 0x31f   :  { %v960_v32 = vsel %vm954_vm6, %v959_v21, %v723_v23  ;;  %v963_v27 = vcvt.f32.s32 %v724_v24  ;;  %v961_v33 = vand.u32 2147483647, %v724_v24  ;;  %v966_v36 = vand.u32 2147483648, %v724_v24 }
 0x320   :  { %755 = vst [vmem:[#allocation8 + $0x30] sm:$0xff] %v960_v32 }
 0x321   :  { %v964_v31 = vcvt.s32.f32 %v963_v27  ;;  %vm962_vm7 = vcmp.lt.f32.partialorder %v961_v33, 8388608.0 }
 0x322   :  { %v693_v34 = vpop.f32.mrf.mxu3 }
 0x323   :  { %v965_v35 = vand.u32 2147483647, %v964_v31  ;;  %v694_v37 = vadd.f32 %v1466_v26, %v693_v34 }
 0x325   :  { %v967_v39 = vor.u32 %v966_v36, %v965_v35  ;;  %v725_v42 = vmax.f32 %v694_v37, 0.0 }
 0x327   :  { %v968_v45 = vsel %vm962_vm7, %v967_v39, %v724_v24  ;;  %v971_v47 = vcvt.f32.s32 %v725_v42  ;;  %v969_v40 = vand.u32 2147483647, %v725_v42  ;;  %v974_v51 = vand.u32 2147483648, %v725_v42 }
 0x328   :  { %756 = vst [vmem:[#allocation8 + $0x38] sm:$0xff] %v968_v45 }
 0x329   :  { %v972_v48 = vcvt.s32.f32 %v971_v47  ;;  %vm970_vm8 = vcmp.lt.f32.partialorder %v969_v40, 8388608.0 }
 0x32a   :  { %v696_v49 = vpop.f32.mrf.mxu3 }
 0x32b   :  { %v973_v50 = vand.u32 2147483647, %v972_v48  ;;  %v697_v41 = vadd.f32 %v1466_v26, %v696_v49 }
 0x32d   :  { %v975_v53 = vor.u32 %v974_v51, %v973_v50  ;;  %v726_v54 = vmax.f32 %v697_v41, 0.0 }
 0x32f   :  { %v976_v46 = vsel %vm970_vm8, %v975_v53, %v725_v42  ;;  %v979_v55 = vcvt.f32.s32 %v726_v54  ;;  %v977_v52 = vand.u32 2147483647, %v726_v54  ;;  %v982_v59 = vand.u32 2147483648, %v726_v54 }
 0x330   :  { %757 = vst [vmem:[#allocation8 + $0x40] sm:$0xff] %v976_v46 }
 0x331   :  { %v980_v57 = vcvt.s32.f32 %v979_v55  ;;  %vm978_vm9 = vcmp.lt.f32.partialorder %v977_v52, 8388608.0 }
 0x332   :  { %v699_v58 = vpop.f32.mrf.mxu3 }
 0x333   :  { %v981_v61 = vand.u32 2147483647, %v980_v57  ;;  %v700_v62 = vadd.f32 %v1466_v26, %v699_v58 }
 0x335   :  { %v983_v63 = vor.u32 %v982_v59, %v981_v61  ;;  %v727_v1 = vmax.f32 %v700_v62, 0.0 }
 0x337   :  { %v984_v44 = vsel %vm978_vm9, %v983_v63, %v726_v54  ;;  %v987_v0 = vcvt.f32.s32 %v727_v1  ;;  %v985_v2 = vand.u32 2147483647, %v727_v1  ;;  %v990_v4 = vand.u32 2147483648, %v727_v1 }
 0x338   :  { %758 = vst [vmem:[#allocation8 + $0x48] sm:$0xff] %v984_v44 }
 0x339   :  { %v988_v8 = vcvt.s32.f32 %v987_v0  ;;  %vm986_vm10 = vcmp.lt.f32.partialorder %v985_v2, 8388608.0 }
 0x33a   :  { %v702_v3 = vpop.f32.mrf.mxu3 }
 0x33b   :  { %v989_v19 = vand.u32 2147483647, %v988_v8  ;;  %v703_v5 = vadd.f32 %v1466_v26, %v702_v3 }
 0x33d   :  { %v991_v22 = vor.u32 %v990_v4, %v989_v19  ;;  %v728_v6 = vmax.f32 %v703_v5, 0.0 }
 0x33f   :  { %v992_v9 = vsel %vm986_vm10, %v991_v22, %v727_v1  ;;  %v995_v38 = vcvt.f32.s32 %v728_v6  ;;  %v993_v12 = vand.u32 2147483647, %v728_v6  ;;  %v998_v14 = vand.u32 2147483648, %v728_v6 }
 0x340   :  { %759 = vst [vmem:[#allocation8 + $0x50] sm:$0xff] %v992_v9 }
 0x341   :  { %v996_v10 = vcvt.s32.f32 %v995_v38  ;;  %vm994_vm11 = vcmp.lt.f32.partialorder %v993_v12, 8388608.0 }
 0x342   :  { %v705_v43 = vpop.f32.mrf.mxu3 }
 0x343   :  { %v997_v13 = vand.u32 2147483647, %v996_v10  ;;  %v706_v56 = vadd.f32 %v1466_v26, %v705_v43 }
 0x345   :  { %v999_v15 = vor.u32 %v998_v14, %v997_v13  ;;  %v729_v16 = vmax.f32 %v706_v56, 0.0 }
 0x347   :  { %v1000_v60 = vsel %vm994_vm11, %v999_v15, %v728_v6  ;;  %v1003_v17 = vcvt.f32.s32 %v729_v16  ;;  %v1001_v7 = vand.u32 2147483647, %v729_v16  ;;  %v1006_v29 = vand.u32 2147483648, %v729_v16 }
 0x348   :  { %760 = vst [vmem:[#allocation8 + $0x58] sm:$0xff] %v1000_v60 }
 0x349   :  { %v1004_v23 = vcvt.s32.f32 %v1003_v17  ;;  %vm1002_vm12 = vcmp.lt.f32.partialorder %v1001_v7, 8388608.0 }
 0x34a   :  { %v708_v11 = vpop.f32.mrf.mxu3 }
 0x34b   :  { %v1005_v28 = vand.u32 2147483647, %v1004_v23  ;;  %v709_v18 = vadd.f32 %v1466_v26, %v708_v11 }
 0x34d   :  { %v1007_v25 = vor.u32 %v1006_v29, %v1005_v28  ;;  %v730_v30 = vmax.f32 %v709_v18, 0.0 }
 0x34f   :  { %v1008_v20 = vsel %vm1002_vm12, %v1007_v25, %v729_v16  ;;  %v1011_v21 = vcvt.f32.s32 %v730_v30  ;;  %v1009_v32 = vand.u32 2147483647, %v730_v30  ;;  %v1014_v33 = vand.u32 2147483648, %v730_v30 }
 0x350   :  { %761 = vst [vmem:[#allocation8 + $0x60] sm:$0xff] %v1008_v20 }
 0x351   :  { %v1012_v24 = vcvt.s32.f32 %v1011_v21  ;;  %vm1010_vm13 = vcmp.lt.f32.partialorder %v1009_v32, 8388608.0 }
 0x352   :  { %v711_v27 = vpop.f32.mrf.mxu3 }
 0x353   :  { %v1013_v31 = vand.u32 2147483647, %v1012_v24  ;;  %v712_v34 = vadd.f32 %v1466_v26, %v711_v27 }
 0x355   :  { %v1015_v35 = vor.u32 %v1014_v33, %v1013_v31  ;;  %v731_v36 = vmax.f32 %v712_v34, 0.0 }
 0x357   :  { %v1016_v37 = vsel %vm1010_vm13, %v1015_v35, %v730_v30  ;;  %v1019_v39 = vcvt.f32.s32 %v731_v36  ;;  %v1017_v45 = vand.u32 2147483647, %v731_v36  ;;  %v1022_v40 = vand.u32 2147483648, %v731_v36 }
 0x358   :  { %762 = vst [vmem:[#allocation8 + $0x68] sm:$0xff] %v1016_v37 }
 0x359   :  { %v1020_v42 = vcvt.s32.f32 %v1019_v39  ;;  %vm1018_vm14 = vcmp.lt.f32.partialorder %v1017_v45, 8388608.0 }
 0x35a   :  { %v714_v47 = vpop.f32.mrf.mxu3 }
 0x35b   :  { %v1021_v48 = vand.u32 2147483647, %v1020_v42  ;;  %v715_v49 = vadd.f32 %v1466_v26, %v714_v47 }
 0x35d   :  { %v1023_v50 = vor.u32 %v1022_v40, %v1021_v48  ;;  %v732_v51 = vmax.f32 %v715_v49, 0.0 }
 0x35f   :  { %v1024_v41 = vsel %vm1018_vm14, %v1023_v50, %v731_v36  ;;  %v1027_v53 = vcvt.f32.s32 %v732_v51  ;;  %v1025_v46 = vand.u32 2147483647, %v732_v51  ;;  %v1030_v57 = vand.u32 2147483648, %v732_v51 }
 0x360   :  { %763 = vst [vmem:[#allocation8 + $0x70] sm:$0xff] %v1024_v41 }
 0x361   :  { %v1028_v54 = vcvt.s32.f32 %v1027_v53  ;;  %vm1026_vm15 = vcmp.lt.f32.partialorder %v1025_v46, 8388608.0 }
 0x363   :  { %v1029_v55 = vand.u32 2147483647, %v1028_v54 }
 0x365   :  { %v1031_v52 = vor.u32 %v1030_v57, %v1029_v55 }
 0x367   :  { %v1032_v26 = vsel %vm1026_vm15, %v1031_v52, %v732_v51 }
 0x368   :  { %764 = vst [vmem:[#allocation8 + $0x78] sm:$0xff] %v1032_v26 }
 0x369   :  { %777 = dma.vmem_to_hbm [thread:$0]  %s770_s11, 2048, %s772_s14, [#allocation4], %s1157_s15, %s1157_s15, %s1158_s16  }
 0x36a   :  { %1148 = dma.done.wait [#allocation4], 2048  }
 0x36b   :  { %1149 = vsyncadd [#allocation4], 4294965248 }
 0x36c   :  { %782 = vsyncpa [#allocation3], 1 }
 0x36d   :  { %783 = vsyncpa [#allocation6], 1 }
 0x36e   :  { %784 = vsyncpa [#allocation4], 1 }

</bundles_post_ra>
